<compile_context>
chip_gen: v6e
topology: v6e:2x2x1
jax: 0.10.0
libtpu: 0.0.40
codegen_flags: <defaults>
</compile_context>

<pallas_src>
import functools

import jax
import jax.numpy as jnp
from jax.experimental import pallas as pl
from jax.experimental.pallas import tpu as pltpu


def _round_up(x, m):
    return ((x + m - 1) // m) * m


def seq2seq_rnn_kernel(x_ref, w_ih_ref, w_hh_ref, b_rnn_ref,
                       w_lin_ref, b_lin_ref, out_ref, proj_ref,
                       *, seq_len, batch_pad):
    """Full RNN recurrence + final linear projection in one invocation.

    x_ref     : (T*Bp, D_in) VMEM  time-major rows (row t*Bp + b == x[b, t])
    w_ih_ref  : (D_in, Hp)   VMEM  transposed + lane-padded weight_ih_l0
    w_hh_ref  : (Hp, Hp)     VMEM  transposed + padded weight_hh_l0
    b_rnn_ref : (1, Hp)      VMEM  b_ih + b_hh, padded
    w_lin_ref : (Hp, Op)     VMEM  transposed + padded linear.weight
    b_lin_ref : (1, Op)      VMEM  padded linear.bias
    out_ref   : (Bp, Op)     VMEM  lane/sublane-dense output (sliced outside)
    proj_ref  : (T*Bp, Hp)   VMEM  scratch: per-timestep pre-activations
    """
    T, Bp = seq_len, batch_pad

    # One-shot input projection for every (t, b): one MXU matmul, off the
    # serial path.  (T*Bp, D_in) @ (D_in, Hp) + bias -> (T*Bp, Hp), parked in
    # VMEM scratch so the recurrence only keeps h / w_hh / w_lin in vregs.
    proj_ref[...] = (jnp.dot(x_ref[...], w_ih_ref[...],
                             preferred_element_type=jnp.float32)
                     + b_rnn_ref[...])

    w_hh = w_hh_ref[...]

    # Serial recurrence, fully unrolled (T static & small), h carried in
    # vregs.  h_0 = 0 (PyTorch default) => h_1 = tanh(pre[0]).
    # Each pre_t load is a single aligned (8,128) static-slice vld.
    h = jnp.tanh(proj_ref[0:Bp, :])
    for t in range(1, T):
        pre_t = proj_ref[t * Bp:(t + 1) * Bp, :]
        h = jnp.tanh(pre_t
                     + jnp.dot(h, w_hh, preferred_element_type=jnp.float32))

    # linear(out[:, -1, :]) == linear(h_T); single full-vreg store.
    out_ref[...] = (jnp.dot(h, w_lin_ref[...],
                            preferred_element_type=jnp.float32)
                    + b_lin_ref[...]).astype(out_ref.dtype)


def prepare_seq2seq_params(w_ih, w_hh, b_ih, b_hh, w_lin, b_lin):
    """One-time weight prep (transpose + zero-pad to lane-dense widths).

    Call once at init; the padded hidden columns get zero pre-activations
    (tanh(0)=0) so they stay exactly zero through the recurrence, and padded
    output columns are sliced off in the wrapper.
    """
    f32 = jnp.float32
    H, D_in = w_ih.shape          # PyTorch weight_ih_l0 is (H, D_in)
    O = w_lin.shape[0]            # PyTorch linear.weight is (O, H)
    Hp = _round_up(H, 128)
    Op = _round_up(O, 128)

    w_ih_p = jnp.zeros((D_in, Hp), f32).at[:, :H].set(w_ih.T.astype(f32))
    w_hh_p = jnp.zeros((Hp, Hp), f32).at[:H, :H].set(w_hh.T.astype(f32))
    b_rnn_p = jnp.zeros((1, Hp), f32).at[0, :H].set((b_ih + b_hh).astype(f32))
    w_lin_p = jnp.zeros((Hp, Op), f32).at[:H, :O].set(w_lin.T.astype(f32))
    b_lin_p = jnp.zeros((1, Op), f32).at[0, :O].set(b_lin.astype(f32))

    return {
        "w_ih": w_ih_p, "w_hh": w_hh_p, "b_rnn": b_rnn_p,
        "w_lin": w_lin_p, "b_lin": b_lin_p,
        "output_size": O,
    }


def seq2seq_rnn(x, params):
    """x: (B, T, D_in) float32, batch_first.  params: prepare_seq2seq_params()."""
    B, T, D_in = x.shape
    Bp = _round_up(B, 8)                      # sublane-dense batch rows
    Hp = params["w_hh"].shape[0]
    Op = params["w_lin"].shape[1]
    O = params["output_size"]
    f32 = jnp.float32

    # Time-major + batch padded to a multiple of 8, then a free contiguous
    # reshape: row t*Bp + b holds x[b, t].  Padded rows carry zeros; their
    # hidden states are bounded garbage but never touch the real rows
    # (the recurrence is row-independent) and are sliced off below.
    x_tm = jnp.transpose(x.astype(f32), (1, 0, 2))        # (T, B, D_in)
    if Bp != B:
        x_tm = jnp.pad(x_tm, ((0, 0), (0, Bp - B), (0, 0)))
    x2d = x_tm.reshape(T * Bp, D_in)

    kernel = functools.partial(seq2seq_rnn_kernel, seq_len=T, batch_pad=Bp)

    out_padded = pl.pallas_call(
        kernel,
        out_shape=jax.ShapeDtypeStruct((Bp, Op), f32),
        in_specs=[
            pl.BlockSpec(memory_space=pltpu.VMEM),  # x2d   (T*Bp, D_in)
            pl.BlockSpec(memory_space=pltpu.VMEM),  # w_ih  (D_in, Hp)
            pl.BlockSpec(memory_space=pltpu.VMEM),  # w_hh  (Hp, Hp)
            pl.BlockSpec(memory_space=pltpu.VMEM),  # b_rnn (1, Hp)
            pl.BlockSpec(memory_space=pltpu.VMEM),  # w_lin (Hp, Op)
            pl.BlockSpec(memory_space=pltpu.VMEM),  # b_lin (1, Op)
        ],
        out_specs=pl.BlockSpec(memory_space=pltpu.VMEM),
        scratch_shapes=[pltpu.VMEM((T * Bp, Hp), f32)],    # proj scratch
    )(x2d, params["w_ih"], params["w_hh"], params["b_rnn"],
      params["w_lin"], params["b_lin"])

    return out_padded[:B, :O]


def seq2seq_rnn_reference(x, w_ih, w_hh, b_ih, b_hh, w_lin, b_lin):
    """Pure-JAX reference matching PyTorch nn.RNN(batch_first=True) + Linear."""
    B, T, _ = x.shape
    H = w_hh.shape[0]
    h = jnp.zeros((B, H), jnp.float32)
    for t in range(T):
        h = jnp.tanh(x[:, t, :] @ w_ih.T + b_ih + h @ w_hh.T + b_hh)
    return h @ w_lin.T + b_lin


if __name__ == "__main__":
    # Shapes consistent with the module spec (input_dim=64, seq_len=10),
    # small batch / hidden / output.
    batch, seq_len, input_size, hidden_size, output_size = 4, 10, 64, 32, 16

    key = jax.random.PRNGKey(0)
    k = jax.random.split(key, 7)
    s = 1.0 / (hidden_size ** 0.5)   # PyTorch-style uniform(-1/sqrt(H), 1/sqrt(H))
    x = jax.random.normal(k[0], (batch, seq_len, input_size), jnp.float32)
    w_ih = jax.random.uniform(k[1], (hidden_size, input_size), jnp.float32, -s, s)
    w_hh = jax.random.uniform(k[2], (hidden_size, hidden_size), jnp.float32, -s, s)
    b_ih = jax.random.uniform(k[3], (hidden_size,), jnp.float32, -s, s)
    b_hh = jax.random.uniform(k[4], (hidden_size,), jnp.float32, -s, s)
    w_lin = jax.random.uniform(k[5], (output_size, hidden_size), jnp.float32, -s, s)
    b_lin = jax.random.uniform(k[6], (output_size,), jnp.float32, -s, s)

    # One-time weight prep (hoisted out of the per-call path).
    params = prepare_seq2seq_params(w_ih, w_hh, b_ih, b_hh, w_lin, b_lin)
    params = jax.block_until_ready(params)

    out = seq2seq_rnn(x, params)
    out = jax.block_until_ready(out)

    ref = seq2seq_rnn_reference(x, w_ih, w_hh, b_ih, b_hh, w_lin, b_lin)
    assert out.shape == (batch, output_size)
    assert jnp.allclose(out, ref, atol=1e-5, rtol=1e-5), "mismatch vs reference"

    print("KERNEL_OK")
</pallas_src>

<mosaic_0001>
module attributes {stable_mosaic.version = 11 : i64} {
  func.func @seq2seq_rnn_kernel(%arg0: memref<80x64xf32, #tpu.memory_space<vmem>>, %arg1: memref<64x128xf32, #tpu.memory_space<vmem>>, %arg2: memref<128x128xf32, #tpu.memory_space<vmem>>, %arg3: memref<1x128xf32, #tpu.memory_space<vmem>>, %arg4: memref<128x128xf32, #tpu.memory_space<vmem>>, %arg5: memref<1x128xf32, #tpu.memory_space<vmem>>, %arg6: memref<8x128xf32, #tpu.memory_space<vmem>>, %arg7: memref<80x128xf32, #tpu.memory_space<vmem>>) attributes {dimension_semantics = [], scalar_prefetch = 0 : i64, scratch_operands = 1 : i64, tpu.core_type = #tpu.core_type<tc>} {
    %c0 = arith.constant 0 : index
    %c0_0 = arith.constant 0 : index
    %0 = vector.load %arg0[%c0, %c0_0] : memref<80x64xf32, #tpu.memory_space<vmem>>, vector<80x64xf32>
    %c0_1 = arith.constant 0 : index
    %c0_2 = arith.constant 0 : index
    %1 = vector.load %arg1[%c0_1, %c0_2] : memref<64x128xf32, #tpu.memory_space<vmem>>, vector<64x128xf32>
    %cst = arith.constant dense<0.000000e+00> : vector<80x128xf32>
    %2 = tpu.matmul %0, %1, %cst {dimension_numbers = #tpu.dot_dimension_numbers<[1], [0], [0], [1], [0, 0, 1, 1], [], []>} : vector<80x64xf32>, vector<64x128xf32>, vector<80x128xf32> -> vector<80x128xf32>
    %c0_3 = arith.constant 0 : index
    %c0_4 = arith.constant 0 : index
    %3 = vector.load %arg3[%c0_3, %c0_4] : memref<1x128xf32, #tpu.memory_space<vmem>>, vector<1x128xf32>
    %4 = vector.broadcast %3 : vector<1x128xf32> to vector<80x128xf32>
    %5 = arith.addf %2, %4 : vector<80x128xf32>
    %c0_5 = arith.constant 0 : index
    %c0_6 = arith.constant 0 : index
    %6 = vector.load %arg7[%c0_5, %c0_6] : memref<80x128xf32, #tpu.memory_space<vmem>>, vector<80x128xf32>
    tpu.vector_store %arg7[%c0_5, %c0_6], %5 {strides = array<i32>} : memref<80x128xf32, #tpu.memory_space<vmem>>, vector<80x128xf32>,
    %c0_7 = arith.constant 0 : index
    %c0_8 = arith.constant 0 : index
    %7 = vector.load %arg2[%c0_7, %c0_8] : memref<128x128xf32, #tpu.memory_space<vmem>>, vector<128x128xf32>
    %c0_9 = arith.constant 0 : index
    %c0_10 = arith.constant 0 : index
    %8 = vector.load %arg7[%c0_9, %c0_10] : memref<80x128xf32, #tpu.memory_space<vmem>>, vector<8x128xf32>
    %9 = math.tanh %8 : vector<8x128xf32>
    %c8 = arith.constant 8 : index
    %c0_11 = arith.constant 0 : index
    %10 = vector.load %arg7[%c8, %c0_11] : memref<80x128xf32, #tpu.memory_space<vmem>>, vector<8x128xf32>
    %cst_12 = arith.constant dense<0.000000e+00> : vector<8x128xf32>
    %11 = tpu.matmul %9, %7, %cst_12 {dimension_numbers = #tpu.dot_dimension_numbers<[1], [0], [0], [1], [0, 0, 1, 1], [], []>} : vector<8x128xf32>, vector<128x128xf32>, vector<8x128xf32> -> vector<8x128xf32>
    %12 = arith.addf %10, %11 : vector<8x128xf32>
    %13 = math.tanh %12 : vector<8x128xf32>
    %c16 = arith.constant 16 : index
    %c0_13 = arith.constant 0 : index
    %14 = vector.load %arg7[%c16, %c0_13] : memref<80x128xf32, #tpu.memory_space<vmem>>, vector<8x128xf32>
    %cst_14 = arith.constant dense<0.000000e+00> : vector<8x128xf32>
    %15 = tpu.matmul %13, %7, %cst_14 {dimension_numbers = #tpu.dot_dimension_numbers<[1], [0], [0], [1], [0, 0, 1, 1], [], []>} : vector<8x128xf32>, vector<128x128xf32>, vector<8x128xf32> -> vector<8x128xf32>
    %16 = arith.addf %14, %15 : vector<8x128xf32>
    %17 = math.tanh %16 : vector<8x128xf32>
    %c24 = arith.constant 24 : index
    %c0_15 = arith.constant 0 : index
    %18 = vector.load %arg7[%c24, %c0_15] : memref<80x128xf32, #tpu.memory_space<vmem>>, vector<8x128xf32>
    %cst_16 = arith.constant dense<0.000000e+00> : vector<8x128xf32>
    %19 = tpu.matmul %17, %7, %cst_16 {dimension_numbers = #tpu.dot_dimension_numbers<[1], [0], [0], [1], [0, 0, 1, 1], [], []>} : vector<8x128xf32>, vector<128x128xf32>, vector<8x128xf32> -> vector<8x128xf32>
    %20 = arith.addf %18, %19 : vector<8x128xf32>
    %21 = math.tanh %20 : vector<8x128xf32>
    %c32 = arith.constant 32 : index
    %c0_17 = arith.constant 0 : index
    %22 = vector.load %arg7[%c32, %c0_17] : memref<80x128xf32, #tpu.memory_space<vmem>>, vector<8x128xf32>
    %cst_18 = arith.constant dense<0.000000e+00> : vector<8x128xf32>
    %23 = tpu.matmul %21, %7, %cst_18 {dimension_numbers = #tpu.dot_dimension_numbers<[1], [0], [0], [1], [0, 0, 1, 1], [], []>} : vector<8x128xf32>, vector<128x128xf32>, vector<8x128xf32> -> vector<8x128xf32>
    %24 = arith.addf %22, %23 : vector<8x128xf32>
    %25 = math.tanh %24 : vector<8x128xf32>
    %c40 = arith.constant 40 : index
    %c0_19 = arith.constant 0 : index
    %26 = vector.load %arg7[%c40, %c0_19] : memref<80x128xf32, #tpu.memory_space<vmem>>, vector<8x128xf32>
    %cst_20 = arith.constant dense<0.000000e+00> : vector<8x128xf32>
    %27 = tpu.matmul %25, %7, %cst_20 {dimension_numbers = #tpu.dot_dimension_numbers<[1], [0], [0], [1], [0, 0, 1, 1], [], []>} : vector<8x128xf32>, vector<128x128xf32>, vector<8x128xf32> -> vector<8x128xf32>
    %28 = arith.addf %26, %27 : vector<8x128xf32>
    %29 = math.tanh %28 : vector<8x128xf32>
    %c48 = arith.constant 48 : index
    %c0_21 = arith.constant 0 : index
    %30 = vector.load %arg7[%c48, %c0_21] : memref<80x128xf32, #tpu.memory_space<vmem>>, vector<8x128xf32>
    %cst_22 = arith.constant dense<0.000000e+00> : vector<8x128xf32>
    %31 = tpu.matmul %29, %7, %cst_22 {dimension_numbers = #tpu.dot_dimension_numbers<[1], [0], [0], [1], [0, 0, 1, 1], [], []>} : vector<8x128xf32>, vector<128x128xf32>, vector<8x128xf32> -> vector<8x128xf32>
    %32 = arith.addf %30, %31 : vector<8x128xf32>
    %33 = math.tanh %32 : vector<8x128xf32>
    %c56 = arith.constant 56 : index
    %c0_23 = arith.constant 0 : index
    %34 = vector.load %arg7[%c56, %c0_23] : memref<80x128xf32, #tpu.memory_space<vmem>>, vector<8x128xf32>
    %cst_24 = arith.constant dense<0.000000e+00> : vector<8x128xf32>
    %35 = tpu.matmul %33, %7, %cst_24 {dimension_numbers = #tpu.dot_dimension_numbers<[1], [0], [0], [1], [0, 0, 1, 1], [], []>} : vector<8x128xf32>, vector<128x128xf32>, vector<8x128xf32> -> vector<8x128xf32>
    %36 = arith.addf %34, %35 : vector<8x128xf32>
    %37 = math.tanh %36 : vector<8x128xf32>
    %c64 = arith.constant 64 : index
    %c0_25 = arith.constant 0 : index
    %38 = vector.load %arg7[%c64, %c0_25] : memref<80x128xf32, #tpu.memory_space<vmem>>, vector<8x128xf32>
    %cst_26 = arith.constant dense<0.000000e+00> : vector<8x128xf32>
    %39 = tpu.matmul %37, %7, %cst_26 {dimension_numbers = #tpu.dot_dimension_numbers<[1], [0], [0], [1], [0, 0, 1, 1], [], []>} : vector<8x128xf32>, vector<128x128xf32>, vector<8x128xf32> -> vector<8x128xf32>
    %40 = arith.addf %38, %39 : vector<8x128xf32>
    %41 = math.tanh %40 : vector<8x128xf32>
    %c72 = arith.constant 72 : index
    %c0_27 = arith.constant 0 : index
    %42 = vector.load %arg7[%c72, %c0_27] : memref<80x128xf32, #tpu.memory_space<vmem>>, vector<8x128xf32>
    %cst_28 = arith.constant dense<0.000000e+00> : vector<8x128xf32>
    %43 = tpu.matmul %41, %7, %cst_28 {dimension_numbers = #tpu.dot_dimension_numbers<[1], [0], [0], [1], [0, 0, 1, 1], [], []>} : vector<8x128xf32>, vector<128x128xf32>, vector<8x128xf32> -> vector<8x128xf32>
    %44 = arith.addf %42, %43 : vector<8x128xf32>
    %45 = math.tanh %44 : vector<8x128xf32>
    %c0_29 = arith.constant 0 : index
    %c0_30 = arith.constant 0 : index
    %46 = vector.load %arg4[%c0_29, %c0_30] : memref<128x128xf32, #tpu.memory_space<vmem>>, vector<128x128xf32>
    %cst_31 = arith.constant dense<0.000000e+00> : vector<8x128xf32>
    %47 = tpu.matmul %45, %46, %cst_31 {dimension_numbers = #tpu.dot_dimension_numbers<[1], [0], [0], [1], [0, 0, 1, 1], [], []>} : vector<8x128xf32>, vector<128x128xf32>, vector<8x128xf32> -> vector<8x128xf32>
    %c0_32 = arith.constant 0 : index
    %c0_33 = arith.constant 0 : index
    %48 = vector.load %arg5[%c0_32, %c0_33] : memref<1x128xf32, #tpu.memory_space<vmem>>, vector<1x128xf32>
    %49 = vector.broadcast %48 : vector<1x128xf32> to vector<8x128xf32>
    %50 = arith.addf %47, %49 : vector<8x128xf32>
    %c0_34 = arith.constant 0 : index
    %c0_35 = arith.constant 0 : index
    %51 = vector.load %arg6[%c0_34, %c0_35] : memref<8x128xf32, #tpu.memory_space<vmem>>, vector<8x128xf32>
    tpu.vector_store %arg6[%c0_34, %c0_35], %50 {strides = array<i32>} : memref<8x128xf32, #tpu.memory_space<vmem>>, vector<8x128xf32>,
    return
  }
}

</mosaic_0001>

<bundles_post_ra>
// kernel: tpu_custom_call.1
= control target key start
LH: loop header
LB: loop body
LE: loop exit
PB: predicated region body
PF: predicated region fallthrough
CT: control target
= control target key end

     0   :  { %11 = vsyncpa [#allocation4], 0  ;;  %s2223_s0 = inlined_call_operand.vmem [shape: f32[80,64], index: 0, kind: input, shape index: {}]   ;;  %s2224_s1 = inlined_call_operand.hbm [shape: f32[64,128], index: 1, kind: input, shape index: {}]   ;;  %s2225_s2 = inlined_call_operand.vmem [shape: f32[128,128], index: 2, kind: input, shape index: {}]   ;;  %s2226_s3 = inlined_call_operand.vmem [shape: f32[1,128], index: 3, kind: input, shape index: {}]   ;;  %s2227_s4 = inlined_call_operand.hbm [shape: f32[128,128], index: 4, kind: input, shape index: {}]   ;;  %s2228_s5 = inlined_call_operand.vmem [shape: f32[1,128], index: 5, kind: input, shape index: {}]   ;;  %s2229_s6 = inlined_call_operand.hbm [shape: f32[8,128], index: 6, kind: output, shape index: {}]  }
   0x1   :  { %12 = vsyncpa [#allocation7], 0 }
   0x2   :  { %13 = vsyncpa [#allocation5], 0  ;;  %s1692_s21 = smov [#allocation3]  }
   0x3   :  { %s21_s22 = sshll.u32 %s1692_s21, 4  ;;  %s22_s22 = int_to_ptr.vmem [resolvable:$true] %s21_s22 }
   0x4   :  { %s1634_s23 = scalar_lea.vmem %s22_s22, 1024  ;;  %p1639_p1 = scmp.lt.s32.totalorder %s22_s22, %s22_s22 }
   0x5   :  { %p1635_p0 = scmp.ne.s32.totalorder %s22_s22, %s1634_s23  ;;  %p1640_p2 = scmp.lt.s32.totalorder %s1634_s23, %s1634_s23 }
   0x7   :  { %p1641_p3 = por %p1640_p2, %p1639_p1 }
   0x9   :  { %p1642_p4 = pnand %p1641_p3, %p1635_p0 }
   0xb   :  { %1645 = shalt.err (!%p1642_p4)
}
   0xc   :  { %s1693_s24 = smov 128   ;;  %s1694_s25 = smov 8  }
   0xd   :  { %27 = dma.hbm_to_vmem [thread:$0]  %s2224_s1, 1024, %s22_s22, [#allocation4], %s1693_s24, %s1693_s24, %s1694_s25  }
   0xe   :  { %s1695_s28 = smov [#allocation6]  }
   0xf   :  { %s37_s29 = sshll.u32 %s1695_s28, 4  ;;  %s38_s29 = int_to_ptr.vmem [resolvable:$true] %s37_s29 }
  0x10   :  { %s1654_s30 = scalar_lea.vmem %s38_s29, 2048  ;;  %p1659_p6 = scmp.lt.s32.totalorder %s38_s29, %s38_s29 }
  0x11   :  { %p1655_p5 = scmp.ne.s32.totalorder %s38_s29, %s1654_s30  ;;  %p1660_p7 = scmp.lt.s32.totalorder %s1654_s30, %s1654_s30 }
  0x13   :  { %p1661_p8 = por %p1660_p7, %p1659_p6 }
  0x15   :  { %p1662_p9 = pnand %p1661_p8, %p1655_p5 }
  0x17   :  { %1665 = shalt.err (!%p1662_p9)
}
  0x18   :  { %43 = dma.hbm_to_vmem [thread:$0]  %s2227_s4, 2048, %s38_s29, [#allocation7], %s1693_s24, %s1693_s24, %s1694_s25  }
  0x19   :  { %1686 = dma.done.wait [#allocation4], 1024  }
  0x1a   :  { %1687 = vsyncadd [#allocation4], 4294966272 }
  0x1b   :  { %1688 = dma.done.wait [#allocation7], 2048  }
  0x1c   :  { %1689 = vsyncadd [#allocation7], 4294965248  ;;  %v1696_v0 = vmov 0.0   ;;  %v69_v1 = vld [vmem:[#allocation3 + $0x38] sm:$0xff]  ;;  %v68_v2 = vld [vmem:[#allocation3 + $0x30] sm:$0xff]  ;;  %vm77_vm0 = vcmask 523264  }
  0x1d   :  { %1249 = vmatprep.subr.mxu1 %v1696_v0  ;;  %1218 = vmatprep.subr.mxu0 %v69_v1  ;;  %v67_v3 = vld [vmem:[#allocation3 + $0x28] sm:$0xff]  ;;  %v52_v4 = vld [vmem:[%s2223_s0] sm:$0xff]  ;;  %v1748_v5 = vld [vmem:[%s2225_s2 + $0x78] sm:$0xff]  ;;  %vm1697_vm1 = vmmov 0   ;;  %s1698_s9 = smov [#allocation8]  }
  0x1e   :  { %1219 = vmatpush3.msra.mxu0 %v69_v1  ;;  %1234 = vmatprep.mubr.msk.f32.mxu0 %vm77_vm0, %v52_v4  ;;  %v1753_v6 = vld [vmem:[%s2225_s2 + $0x70] sm:$0xff]  ;;  %v66_v7 = vld [vmem:[#allocation3 + $0x20] sm:$0xff]  ;;  %v1760_v8 = vld [vmem:[%s2225_s2 + $0x68] sm:$0xff]  ;;  %s1008_s4 = sshll.u32 %s1698_s9, 4  ;;  %s1009_s4 = int_to_ptr.vmem [resolvable:$true] %s1008_s4 }
  0x1f   :  { %1220 = vmatprep.subr.mxu0 %v68_v2  ;;  %1250 = vmatpush3.msra.mxu1 %v1748_v5  ;;  %v65_v9 = vld [vmem:[#allocation3 + $0x18] sm:$0xff]  ;;  %v1767_v10 = vld [vmem:[%s2225_s2 + $0x60] sm:$0xff]  ;;  %v64_v11 = vld [vmem:[#allocation3 + $0x10] sm:$0xff]  ;;  %s1666_s10 = scalar_lea.vmem %s1009_s4, 128  ;;  %p1671_p11 = scmp.lt.s32.totalorder %s1009_s4, %s1009_s4 }
  0x20   :  { %1221 = vmatpush3.msra.mxu0 %v68_v2  ;;  %1251 = vmatprep.subr.mxu1 %v1696_v0  ;;  %v1774_v12 = vld [vmem:[%s2225_s2 + $0x58] sm:$0xff]  ;;  %v63_v13 = vld [vmem:[#allocation3 + $0x8] sm:$0xff]  ;;  %v1781_v14 = vld [vmem:[%s2225_s2 + $0x50] sm:$0xff]  ;;  %p1667_p10 = scmp.ne.s32.totalorder %s1009_s4, %s1666_s10  ;;  %p1672_p12 = scmp.lt.s32.totalorder %s1666_s10, %s1666_s10 }
  0x21   :  { %1222 = vmatprep.subr.mxu0 %v67_v3  ;;  %1252 = vmatpush3.msra.mxu1 %v1753_v6  ;;  %v62_v15 = vld [vmem:[#allocation3] sm:$0xff]  ;;  %v53_v16 = vld [vmem:[%s2223_s0 + $0x8] sm:$0xff]  ;;  %v1824_v19 = vld [vmem:[%s2225_s2 + $0x38] sm:$0xff] }
  0x22   :  { %1223 = vmatpush3.msra.mxu0 %v67_v3  ;;  %1253 = vmatprep.subr.mxu1 %v1696_v0  ;;  %v1807_v17 = vld [vmem:[%s2225_s2 + $0x48] sm:$0xff]  ;;  %v1815_v18 = vld [vmem:[%s2225_s2 + $0x40] sm:$0xff]  ;;  %v1833_v20 = vld [vmem:[%s2225_s2 + $0x30] sm:$0xff]  ;;  %p1673_p13 = por %p1672_p12, %p1671_p11 }
  0x23   :  { %1224 = vmatprep.subr.mxu0 %v66_v7  ;;  %1254 = vmatpush3.msra.mxu1 %v1760_v8  ;;  %v1838_v21 = vld [vmem:[%s2225_s2 + $0x28] sm:$0xff]  ;;  %v1848_v22 = vld [vmem:[%s2225_s2 + $0x20] sm:$0xff]  ;;  %v1857_v23 = vld [vmem:[%s2225_s2 + $0x18] sm:$0xff] }
  0x24   :  { %1225 = vmatpush3.msra.mxu0 %v66_v7  ;;  %1255 = vmatprep.subr.mxu1 %v1696_v0  ;;  %v1866_v24 = vld [vmem:[%s2225_s2 + $0x10] sm:$0xff]  ;;  %v1875_v25 = vld [vmem:[%s2225_s2 + $0x8] sm:$0xff]  ;;  %v1884_v26 = vld [vmem:[%s2225_s2] sm:$0xff]  ;;  %p1674_p0 = pnand %p1673_p13, %p1667_p10 }
  0x25   :  { %1226 = vmatprep.subr.mxu0 %v65_v9  ;;  %1256 = vmatpush3.msra.mxu1 %v1767_v10  ;;  %v54_v27 = vld [vmem:[%s2223_s0 + $0x10] sm:$0xff]  ;;  %v55_v28 = vld [vmem:[%s2223_s0 + $0x18] sm:$0xff]  ;;  %v1907_v30 = vld [vmem:[%s2226_s3] ss:$0 sm:$0xff] }
  0x26   :  { %1227 = vmatpush3.msra.mxu0 %v65_v9  ;;  %1257 = vmatprep.subr.mxu1 %v1696_v0  ;;  %v56_v34 = vld [vmem:[%s2223_s0 + $0x20] sm:$0xff]  ;;  %v57_v35 = vld [vmem:[%s2223_s0 + $0x28] sm:$0xff]  ;;  %v58_v36 = vld [vmem:[%s2223_s0 + $0x30] sm:$0xff] }
  0x27   :  { %1228 = vmatprep.subr.mxu0 %v64_v11  ;;  %1258 = vmatpush3.msra.mxu1 %v1774_v12  ;;  %v59_v37 = vld [vmem:[%s2223_s0 + $0x38] sm:$0xff]  ;;  %v60_v38 = vld [vmem:[%s2223_s0 + $0x40] sm:$0xff]  ;;  %v61_v39 = vld [vmem:[%s2223_s0 + $0x48] sm:$0xff] }
  0x28   :  { %1229 = vmatpush3.msra.mxu0 %v64_v11  ;;  %1259 = vmatprep.subr.mxu1 %v1696_v0 }
  0x29   :  { %1230 = vmatprep.subr.mxu0 %v63_v13  ;;  %1260 = vmatpush3.msra.mxu1 %v1781_v14 }
  0x2a   :  { %1231 = vmatpush3.msra.mxu0 %v63_v13  ;;  %1261 = vmatprep.subr.mxu1 %v1696_v0 }
  0x2b   :  { %1232 = vmatprep.subr.mxu0 %v62_v15  ;;  %1262 = vmatpush3.msra.mxu1 %v1807_v17 }
  0x2c   :  { %1233 = vmatpush3.msra.mxu0 %v62_v15  ;;  %1263 = vmatprep.subr.mxu1 %v1696_v0 }
  0x2d   :  { %1235 = vmatmul.mubr.msk.f32.vlgmr.msra.gmra.mxu0 %vm77_vm0, %v53_v16  ;;  %1284 = vmatprep.subr.mxu0 %v1696_v0 }
  0x2e   :  { %1285 = vmatpush3.msra.mxu0 %v1748_v5  ;;  %1264 = vmatpush3.msra.mxu1 %v1815_v18 }
  0x2f   :  { %1286 = vmatprep.subr.mxu0 %v1696_v0  ;;  %1265 = vmatprep.subr.mxu1 %v1696_v0 }
  0x30   :  { %1287 = vmatpush3.msra.mxu0 %v1753_v6  ;;  %1266 = vmatpush3.msra.mxu1 %v1824_v19 }
  0x31   :  { %1288 = vmatprep.subr.mxu0 %v1696_v0  ;;  %1267 = vmatprep.subr.mxu1 %v1696_v0 }
  0x32   :  { %1289 = vmatpush3.msra.mxu0 %v1760_v8  ;;  %1268 = vmatpush3.msra.mxu1 %v1833_v20 }
  0x33   :  { %1290 = vmatprep.subr.mxu0 %v1696_v0  ;;  %1281 = vmatprep.mubr.msk.f32.mxu1 %vm1697_vm1, %v1696_v0 }
  0x34   :  { %1291 = vmatpush3.msra.mxu0 %v1767_v10  ;;  %1269 = vmatprep.subr.mxu1 %v1696_v0 }
  0x35   :  { %1292 = vmatprep.subr.mxu0 %v1696_v0  ;;  %1270 = vmatpush3.msra.mxu1 %v1838_v21 }
  0x36   :  { %1293 = vmatpush3.msra.mxu0 %v1774_v12  ;;  %1271 = vmatprep.subr.mxu1 %v1696_v0 }
  0x37   :  { %1294 = vmatprep.subr.mxu0 %v1696_v0  ;;  %1272 = vmatpush3.msra.mxu1 %v1848_v22 }
  0x38   :  { %1295 = vmatpush3.msra.mxu0 %v1781_v14  ;;  %1273 = vmatprep.subr.mxu1 %v1696_v0 }
  0x39   :  { %1296 = vmatprep.subr.mxu0 %v1696_v0  ;;  %1274 = vmatpush3.msra.mxu1 %v1857_v23 }
  0x3a   :  { %1297 = vmatpush3.msra.mxu0 %v1807_v17  ;;  %1275 = vmatprep.subr.mxu1 %v1696_v0 }
  0x3b   :  { %1298 = vmatprep.subr.mxu0 %v1696_v0  ;;  %1276 = vmatpush3.msra.mxu1 %v1866_v24 }
  0x3c   :  { %1299 = vmatpush3.msra.mxu0 %v1815_v18  ;;  %1277 = vmatprep.subr.mxu1 %v1696_v0 }
  0x3d   :  { %1300 = vmatprep.subr.mxu0 %v1696_v0  ;;  %1278 = vmatpush3.msra.mxu1 %v1875_v25 }
  0x3e   :  { %1301 = vmatpush3.msra.mxu0 %v1824_v19  ;;  %1279 = vmatprep.subr.mxu1 %v1696_v0 }
  0x3f   :  { %1302 = vmatprep.subr.mxu0 %v1696_v0  ;;  %1280 = vmatpush3.msra.mxu1 %v1884_v26 }
  0x40   :  { %1303 = vmatpush3.msra.mxu0 %v1833_v20  ;;  %1319 = vmatprep.subr.mxu1 %v1696_v0 }
  0x41   :  { %1304 = vmatprep.subr.mxu0 %v1696_v0  ;;  %1237 = vmatprep.mubr.msk.f32.mxu0 %vm77_vm0, %v54_v27 }
  0x42   :  { %1305 = vmatpush3.msra.mxu0 %v1838_v21 }
  0x43   :  { %1306 = vmatprep.subr.mxu0 %v1696_v0  ;;  %1238 = vmatmul.mubr.msk.f32.gmra.mxu0 %vm77_vm0, %v55_v28 }
  0x44   :  { %1307 = vmatpush3.msra.mxu0 %v1848_v22  ;;  %1240 = vmatprep.mubr.msk.f32.mxu0 %vm77_vm0, %v56_v34  ;;  %v915_v34 = vld [vmem:[#allocation6 + $0x38] sm:$0xff] }
  0x45   :  { %1308 = vmatprep.subr.mxu0 %v1696_v0 }
  0x46   :  { %1309 = vmatpush3.msra.mxu0 %v1857_v23 }
  0x47   :  { %1310 = vmatprep.subr.mxu0 %v1696_v0  ;;  %1241 = vmatmul.mubr.msk.f32.gmra.mxu0 %vm77_vm0, %v57_v35  ;;  %v914_v35 = vld [vmem:[#allocation6 + $0x30] sm:$0xff] }
  0x48   :  { %1311 = vmatpush3.msra.mxu0 %v1866_v24  ;;  %1243 = vmatprep.mubr.msk.f32.mxu0 %vm77_vm0, %v58_v36  ;;  %v913_v36 = vld [vmem:[#allocation6 + $0x28] sm:$0xff] }
  0x49   :  { %1312 = vmatprep.subr.mxu0 %v1696_v0 }
  0x4a   :  { %1313 = vmatpush3.msra.mxu0 %v1875_v25 }
  0x4b   :  { %1314 = vmatprep.subr.mxu0 %v1696_v0  ;;  %1244 = vmatmul.mubr.msk.f32.gmra.mxu0 %vm77_vm0, %v59_v37  ;;  %v912_v37 = vld [vmem:[#allocation6 + $0x20] sm:$0xff] }
  0x4c   :  { %1315 = vmatpush3.msra.mxu0 %v1884_v26  ;;  %1246 = vmatprep.mubr.msk.f32.mxu0 %vm77_vm0, %v60_v38  ;;  %v911_v38 = vld [vmem:[#allocation6 + $0x18] sm:$0xff] }
  0x4d   :  { %1354 = vmatprep.subr.mxu0 %v1696_v0 }
  0x4f   :  { %1247 = vmatmul.mubr.msk.f32.gmra.mxu0 %vm77_vm0, %v61_v39  ;;  %v910_v39 = vld [vmem:[#allocation6 + $0x10] sm:$0xff] }
  0x50   :  { %1316 = vmatprep.mubr.msk.f32.mxu0 %vm1697_vm1, %v1696_v0 }
  0xed   :  { %v1236_v29 = vpop.f32.mrf.mxu0 }
  0xee   :  { %v180_v40 = vadd.f32 %v1236_v29, %v1907_v30 }
  0xef   :  { %v174_v31 = vpop.f32.mrf.mxu0 }
  0xf0   :  { %v175_v32 = vadd.f32 %v1907_v30, %v174_v31 }
  0xf2   :  { %1606 = vtanh.f32 %v175_v32 }
  0xff   :  { %v1607_v33 = vpop.eup %1606 }
 0x100   :  { %1282 = vmatmul.mubr.f32.vlgmr.msra.gmra.mxu1 %v1607_v33  ;;  %v916_v33 = vld [vmem:[#allocation6 + $0x40] sm:$0xff] }
 0x101   :  { %1320 = vmatpush3.msra.mxu1 %v1748_v5  ;;  %1351 = vmatprep.mubr.msk.f32.mxu1 %vm1697_vm1, %v1696_v0 }
 0x102   :  { %1321 = vmatprep.subr.mxu1 %v1696_v0 }
 0x103   :  { %1322 = vmatpush3.msra.mxu1 %v1753_v6  ;;  %v1239_v45 = vpop.f32.mrf.mxu0 }
 0x104   :  { %1323 = vmatprep.subr.mxu1 %v1696_v0  ;;  %v190_v58 = vadd.f32 %v1239_v45, %v1907_v30 }
 0x105   :  { %1324 = vmatpush3.msra.mxu1 %v1760_v8  ;;  %v184_v46 = vpop.f32.mrf.mxu0 }
 0x106   :  { %1325 = vmatprep.subr.mxu1 %v1696_v0  ;;  %v185_v53 = vadd.f32 %v1907_v30, %v184_v46 }
 0x107   :  { %1326 = vmatpush3.msra.mxu1 %v1767_v10  ;;  %v2005_v47 = vpop.f32.mrf.mxu0 }
 0x108   :  { %1327 = vmatprep.subr.mxu1 %v1696_v0  ;;  %v200_v7 = vadd.f32 %v2005_v47, %v1907_v30  ;;  %v1029_v47 = vld [vmem:[%s2228_s5] ss:$0 sm:$0xff] }
 0x109   :  { %1328 = vmatpush3.msra.mxu1 %v1774_v12  ;;  %v2007_v48 = vpop.f32.mrf.mxu0 }
 0x10a   :  { %1329 = vmatprep.subr.mxu1 %v1696_v0  ;;  %v195_v63 = vadd.f32 %v1907_v30, %v2007_v48 }
 0x10b   :  { %1330 = vmatpush3.msra.mxu1 %v1781_v14  ;;  %v2009_v49 = vpop.f32.mrf.mxu0 }
 0x10c   :  { %1331 = vmatprep.subr.mxu1 %v1696_v0 }
 0x10d   :  { %1332 = vmatpush3.msra.mxu1 %v1807_v17  ;;  %v2011_v50 = vpop.f32.mrf.mxu0 }
 0x10e   :  { %1333 = vmatprep.subr.mxu1 %v1696_v0  ;;  %v205_v16 = vadd.f32 %v1907_v30, %v2011_v50 }
 0x10f   :  { %1334 = vmatpush3.msra.mxu1 %v1815_v18  ;;  %v2013_v51 = vpop.f32.mrf.mxu0 }
 0x110   :  { %1335 = vmatprep.subr.mxu1 %v1696_v0 }
 0x111   :  { %1336 = vmatpush3.msra.mxu1 %v1824_v19  ;;  %v2015_v52 = vpop.f32.mrf.mxu0 }
 0x112   :  { %1337 = vmatprep.subr.mxu1 %v1696_v0 }
 0x113   :  { %1338 = vmatpush3.msra.mxu1 %v1833_v20 }
 0x114   :  { %1339 = vmatprep.subr.mxu1 %v1696_v0 }
 0x115   :  { %1340 = vmatpush3.msra.mxu1 %v1838_v21 }
 0x116   :  { %1341 = vmatprep.subr.mxu1 %v1696_v0 }
 0x117   :  { %1342 = vmatpush3.msra.mxu1 %v1848_v22 }
 0x118   :  { %1343 = vmatprep.subr.mxu1 %v1696_v0 }
 0x119   :  { %1344 = vmatpush3.msra.mxu1 %v1857_v23 }
 0x11a   :  { %1345 = vmatprep.subr.mxu1 %v1696_v0 }
 0x11b   :  { %1346 = vmatpush3.msra.mxu1 %v1866_v24 }
 0x11c   :  { %1347 = vmatprep.subr.mxu1 %v1696_v0 }
 0x11d   :  { %1348 = vmatpush3.msra.mxu1 %v1875_v25 }
 0x11e   :  { %1349 = vmatprep.subr.mxu1 %v1696_v0 }
 0x11f   :  { %1350 = vmatpush3.msra.mxu1 %v1884_v26 }
 0x120   :  { %1389 = vmatprep.subr.mxu1 %v1696_v0 }
 0x1c0   :  { %v318_v41 = vpop.f32.mrf.mxu1 }
 0x1c1   :  { %v322_v42 = vadd.f32 %v318_v41, %v180_v40  ;;  %v909_v40 = vld [vmem:[#allocation6 + $0x8] sm:$0xff]  ;;  %v908_v41 = vld [vmem:[#allocation6] sm:$0xff] }
 0x1c2   :  { %v1283_v43 = vpop.f32.mrf.mxu1 }
 0x1c3   :  { %1608 = vtanh.f32 %v322_v42  ;;  %v220_v42 = vadd.f32 %v2013_v51, %v1907_v30 }
 0x1d0   :  { %v1609_v44 = vpop.eup %1608 }
 0x1d1   :  { %1317 = vmatmul.mubr.f32.vlgmr.msra.gmra.mxu0 %v1609_v44 }
 0x1d2   :  { %1355 = vmatpush3.msra.mxu0 %v1748_v5  ;;  %1386 = vmatprep.mubr.msk.f32.mxu0 %vm1697_vm1, %v1696_v0 }
 0x1d3   :  { %1356 = vmatprep.subr.mxu0 %v1696_v0 }
 0x1d4   :  { %1357 = vmatpush3.msra.mxu0 %v1753_v6 }
 0x1d5   :  { %1358 = vmatprep.subr.mxu0 %v1696_v0 }
 0x1d6   :  { %1359 = vmatpush3.msra.mxu0 %v1760_v8 }
 0x1d7   :  { %1360 = vmatprep.subr.mxu0 %v1696_v0 }
 0x1d8   :  { %1361 = vmatpush3.msra.mxu0 %v1767_v10 }
 0x1d9   :  { %1362 = vmatprep.subr.mxu0 %v1696_v0 }
 0x1da   :  { %1363 = vmatpush3.msra.mxu0 %v1774_v12 }
 0x1db   :  { %1364 = vmatprep.subr.mxu0 %v1696_v0 }
 0x1dc   :  { %1365 = vmatpush3.msra.mxu0 %v1781_v14 }
 0x1dd   :  { %1366 = vmatprep.subr.mxu0 %v1696_v0 }
 0x1de   :  { %1367 = vmatpush3.msra.mxu0 %v1807_v17 }
 0x1df   :  { %1368 = vmatprep.subr.mxu0 %v1696_v0 }
 0x1e0   :  { %1369 = vmatpush3.msra.mxu0 %v1815_v18 }
 0x1e1   :  { %1370 = vmatprep.subr.mxu0 %v1696_v0 }
 0x1e2   :  { %1371 = vmatpush3.msra.mxu0 %v1824_v19 }
 0x1e3   :  { %1372 = vmatprep.subr.mxu0 %v1696_v0 }
 0x1e4   :  { %1373 = vmatpush3.msra.mxu0 %v1833_v20 }
 0x1e5   :  { %1374 = vmatprep.subr.mxu0 %v1696_v0 }
 0x1e6   :  { %1375 = vmatpush3.msra.mxu0 %v1838_v21 }
 0x1e7   :  { %1376 = vmatprep.subr.mxu0 %v1696_v0 }
 0x1e8   :  { %1377 = vmatpush3.msra.mxu0 %v1848_v22 }
 0x1e9   :  { %1378 = vmatprep.subr.mxu0 %v1696_v0 }
 0x1ea   :  { %1379 = vmatpush3.msra.mxu0 %v1857_v23 }
 0x1eb   :  { %1380 = vmatprep.subr.mxu0 %v1696_v0 }
 0x1ec   :  { %1381 = vmatpush3.msra.mxu0 %v1866_v24 }
 0x1ed   :  { %1382 = vmatprep.subr.mxu0 %v1696_v0 }
 0x1ee   :  { %1383 = vmatpush3.msra.mxu0 %v1875_v25 }
 0x1ef   :  { %1384 = vmatprep.subr.mxu0 %v1696_v0 }
 0x1f0   :  { %1385 = vmatpush3.msra.mxu0 %v1884_v26 }
 0x1f1   :  { %1424 = vmatprep.subr.mxu0 %v1696_v0 }
 0x291   :  { %v391_v54 = vpop.f32.mrf.mxu0 }
 0x292   :  { %v395_v55 = vadd.f32 %v391_v54, %v185_v53 }
 0x293   :  { %v1318_v56 = vpop.f32.mrf.mxu0 }
 0x294   :  { %1610 = vtanh.f32 %v395_v55 }
 0x2a1   :  { %v1611_v57 = vpop.eup %1610 }
 0x2a2   :  { %1352 = vmatmul.mubr.f32.vlgmr.msra.gmra.mxu1 %v1611_v57 }
 0x2a3   :  { %1390 = vmatpush3.msra.mxu1 %v1748_v5  ;;  %1421 = vmatprep.mubr.msk.f32.mxu1 %vm1697_vm1, %v1696_v0 }
 0x2a4   :  { %1391 = vmatprep.subr.mxu1 %v1696_v0 }
 0x2a5   :  { %1392 = vmatpush3.msra.mxu1 %v1753_v6 }
 0x2a6   :  { %1393 = vmatprep.subr.mxu1 %v1696_v0 }
 0x2a7   :  { %1394 = vmatpush3.msra.mxu1 %v1760_v8 }
 0x2a8   :  { %1395 = vmatprep.subr.mxu1 %v1696_v0 }
 0x2a9   :  { %1396 = vmatpush3.msra.mxu1 %v1767_v10 }
 0x2aa   :  { %1397 = vmatprep.subr.mxu1 %v1696_v0 }
 0x2ab   :  { %1398 = vmatpush3.msra.mxu1 %v1774_v12 }
 0x2ac   :  { %1399 = vmatprep.subr.mxu1 %v1696_v0 }
 0x2ad   :  { %1400 = vmatpush3.msra.mxu1 %v1781_v14 }
 0x2ae   :  { %1401 = vmatprep.subr.mxu1 %v1696_v0 }
 0x2af   :  { %1402 = vmatpush3.msra.mxu1 %v1807_v17 }
 0x2b0   :  { %1403 = vmatprep.subr.mxu1 %v1696_v0 }
 0x2b1   :  { %1404 = vmatpush3.msra.mxu1 %v1815_v18 }
 0x2b2   :  { %1405 = vmatprep.subr.mxu1 %v1696_v0 }
 0x2b3   :  { %1406 = vmatpush3.msra.mxu1 %v1824_v19 }
 0x2b4   :  { %1407 = vmatprep.subr.mxu1 %v1696_v0 }
 0x2b5   :  { %1408 = vmatpush3.msra.mxu1 %v1833_v20 }
 0x2b6   :  { %1409 = vmatprep.subr.mxu1 %v1696_v0 }
 0x2b7   :  { %1410 = vmatpush3.msra.mxu1 %v1838_v21 }
 0x2b8   :  { %1411 = vmatprep.subr.mxu1 %v1696_v0 }
 0x2b9   :  { %1412 = vmatpush3.msra.mxu1 %v1848_v22 }
 0x2ba   :  { %1413 = vmatprep.subr.mxu1 %v1696_v0 }
 0x2bb   :  { %1414 = vmatpush3.msra.mxu1 %v1857_v23 }
 0x2bc   :  { %1415 = vmatprep.subr.mxu1 %v1696_v0 }
 0x2bd   :  { %1416 = vmatpush3.msra.mxu1 %v1866_v24 }
 0x2be   :  { %1417 = vmatprep.subr.mxu1 %v1696_v0 }
 0x2bf   :  { %1418 = vmatpush3.msra.mxu1 %v1875_v25 }
 0x2c0   :  { %1419 = vmatprep.subr.mxu1 %v1696_v0 }
 0x2c1   :  { %1420 = vmatpush3.msra.mxu1 %v1884_v26 }
 0x2c2   :  { %1459 = vmatprep.subr.mxu1 %v1696_v0 }
 0x362   :  { %v464_v59 = vpop.f32.mrf.mxu1 }
 0x363   :  { %v468_v60 = vadd.f32 %v464_v59, %v190_v58 }
 0x364   :  { %v1353_v61 = vpop.f32.mrf.mxu1 }
 0x365   :  { %1612 = vtanh.f32 %v468_v60 }
 0x372   :  { %v1613_v62 = vpop.eup %1612 }
 0x373   :  { %1387 = vmatmul.mubr.f32.vlgmr.msra.gmra.mxu0 %v1613_v62 }
 0x374   :  { %1425 = vmatpush3.msra.mxu0 %v1748_v5  ;;  %1456 = vmatprep.mubr.msk.f32.mxu0 %vm1697_vm1, %v1696_v0 }
 0x375   :  { %1426 = vmatprep.subr.mxu0 %v1696_v0 }
 0x376   :  { %1427 = vmatpush3.msra.mxu0 %v1753_v6 }
 0x377   :  { %1428 = vmatprep.subr.mxu0 %v1696_v0 }
 0x378   :  { %1429 = vmatpush3.msra.mxu0 %v1760_v8 }
 0x379   :  { %1430 = vmatprep.subr.mxu0 %v1696_v0 }
 0x37a   :  { %1431 = vmatpush3.msra.mxu0 %v1767_v10 }
 0x37b   :  { %1432 = vmatprep.subr.mxu0 %v1696_v0 }
 0x37c   :  { %1433 = vmatpush3.msra.mxu0 %v1774_v12 }
 0x37d   :  { %1434 = vmatprep.subr.mxu0 %v1696_v0 }
 0x37e   :  { %1435 = vmatpush3.msra.mxu0 %v1781_v14 }
 0x37f   :  { %1436 = vmatprep.subr.mxu0 %v1696_v0 }
 0x380   :  { %1437 = vmatpush3.msra.mxu0 %v1807_v17 }
 0x381   :  { %1438 = vmatprep.subr.mxu0 %v1696_v0 }
 0x382   :  { %1439 = vmatpush3.msra.mxu0 %v1815_v18 }
 0x383   :  { %1440 = vmatprep.subr.mxu0 %v1696_v0 }
 0x384   :  { %1441 = vmatpush3.msra.mxu0 %v1824_v19 }
 0x385   :  { %1442 = vmatprep.subr.mxu0 %v1696_v0 }
 0x386   :  { %1443 = vmatpush3.msra.mxu0 %v1833_v20 }
 0x387   :  { %1444 = vmatprep.subr.mxu0 %v1696_v0 }
 0x388   :  { %1445 = vmatpush3.msra.mxu0 %v1838_v21 }
 0x389   :  { %1446 = vmatprep.subr.mxu0 %v1696_v0 }
 0x38a   :  { %1447 = vmatpush3.msra.mxu0 %v1848_v22 }
 0x38b   :  { %1448 = vmatprep.subr.mxu0 %v1696_v0 }
 0x38c   :  { %1449 = vmatpush3.msra.mxu0 %v1857_v23 }
 0x38d   :  { %1450 = vmatprep.subr.mxu0 %v1696_v0 }
 0x38e   :  { %1451 = vmatpush3.msra.mxu0 %v1866_v24 }
 0x38f   :  { %1452 = vmatprep.subr.mxu0 %v1696_v0 }
 0x390   :  { %1453 = vmatpush3.msra.mxu0 %v1875_v25 }
 0x391   :  { %1454 = vmatprep.subr.mxu0 %v1696_v0 }
 0x392   :  { %1455 = vmatpush3.msra.mxu0 %v1884_v26 }
 0x393   :  { %1494 = vmatprep.subr.mxu0 %v1696_v0 }
 0x433   :  { %v537_v1 = vpop.f32.mrf.mxu0 }
 0x434   :  { %v541_v2 = vadd.f32 %v537_v1, %v195_v63 }
 0x435   :  { %v1388_v3 = vpop.f32.mrf.mxu0 }
 0x436   :  { %1614 = vtanh.f32 %v541_v2 }
 0x443   :  { %v1615_v4 = vpop.eup %1614 }
 0x444   :  { %1422 = vmatmul.mubr.f32.vlgmr.msra.gmra.mxu1 %v1615_v4 }
 0x445   :  { %1460 = vmatpush3.msra.mxu1 %v1748_v5  ;;  %1491 = vmatprep.mubr.msk.f32.mxu1 %vm1697_vm1, %v1696_v0 }
 0x446   :  { %1461 = vmatprep.subr.mxu1 %v1696_v0 }
 0x447   :  { %1462 = vmatpush3.msra.mxu1 %v1753_v6 }
 0x448   :  { %1463 = vmatprep.subr.mxu1 %v1696_v0 }
 0x449   :  { %1464 = vmatpush3.msra.mxu1 %v1760_v8 }
 0x44a   :  { %1465 = vmatprep.subr.mxu1 %v1696_v0 }
 0x44b   :  { %1466 = vmatpush3.msra.mxu1 %v1767_v10 }
 0x44c   :  { %1467 = vmatprep.subr.mxu1 %v1696_v0 }
 0x44d   :  { %1468 = vmatpush3.msra.mxu1 %v1774_v12 }
 0x44e   :  { %1469 = vmatprep.subr.mxu1 %v1696_v0 }
 0x44f   :  { %1470 = vmatpush3.msra.mxu1 %v1781_v14 }
 0x450   :  { %1471 = vmatprep.subr.mxu1 %v1696_v0 }
 0x451   :  { %1472 = vmatpush3.msra.mxu1 %v1807_v17 }
 0x452   :  { %1473 = vmatprep.subr.mxu1 %v1696_v0 }
 0x453   :  { %1474 = vmatpush3.msra.mxu1 %v1815_v18 }
 0x454   :  { %1475 = vmatprep.subr.mxu1 %v1696_v0 }
 0x455   :  { %1476 = vmatpush3.msra.mxu1 %v1824_v19 }
 0x456   :  { %1477 = vmatprep.subr.mxu1 %v1696_v0 }
 0x457   :  { %1478 = vmatpush3.msra.mxu1 %v1833_v20 }
 0x458   :  { %1479 = vmatprep.subr.mxu1 %v1696_v0 }
 0x459   :  { %1480 = vmatpush3.msra.mxu1 %v1838_v21 }
 0x45a   :  { %1481 = vmatprep.subr.mxu1 %v1696_v0 }
 0x45b   :  { %1482 = vmatpush3.msra.mxu1 %v1848_v22 }
 0x45c   :  { %1483 = vmatprep.subr.mxu1 %v1696_v0 }
 0x45d   :  { %1484 = vmatpush3.msra.mxu1 %v1857_v23 }
 0x45e   :  { %1485 = vmatprep.subr.mxu1 %v1696_v0 }
 0x45f   :  { %1486 = vmatpush3.msra.mxu1 %v1866_v24 }
 0x460   :  { %1487 = vmatprep.subr.mxu1 %v1696_v0 }
 0x461   :  { %1488 = vmatpush3.msra.mxu1 %v1875_v25 }
 0x462   :  { %1489 = vmatprep.subr.mxu1 %v1696_v0 }
 0x463   :  { %1490 = vmatpush3.msra.mxu1 %v1884_v26 }
 0x464   :  { %1529 = vmatprep.subr.mxu1 %v1696_v0 }
 0x504   :  { %v610_v9 = vpop.f32.mrf.mxu1 }
 0x505   :  { %v614_v11 = vadd.f32 %v610_v9, %v200_v7 }
 0x506   :  { %v1423_v13 = vpop.f32.mrf.mxu1 }
 0x507   :  { %1616 = vtanh.f32 %v614_v11 }
 0x514   :  { %v1617_v15 = vpop.eup %1616 }
 0x515   :  { %1457 = vmatmul.mubr.f32.vlgmr.msra.gmra.mxu0 %v1617_v15 }
 0x516   :  { %1495 = vmatpush3.msra.mxu0 %v1748_v5  ;;  %1526 = vmatprep.mubr.msk.f32.mxu0 %vm1697_vm1, %v1696_v0 }
 0x517   :  { %1496 = vmatprep.subr.mxu0 %v1696_v0 }
 0x518   :  { %1497 = vmatpush3.msra.mxu0 %v1753_v6 }
 0x519   :  { %1498 = vmatprep.subr.mxu0 %v1696_v0 }
 0x51a   :  { %1499 = vmatpush3.msra.mxu0 %v1760_v8 }
 0x51b   :  { %1500 = vmatprep.subr.mxu0 %v1696_v0 }
 0x51c   :  { %1501 = vmatpush3.msra.mxu0 %v1767_v10 }
 0x51d   :  { %1502 = vmatprep.subr.mxu0 %v1696_v0 }
 0x51e   :  { %1503 = vmatpush3.msra.mxu0 %v1774_v12 }
 0x51f   :  { %1504 = vmatprep.subr.mxu0 %v1696_v0 }
 0x520   :  { %1505 = vmatpush3.msra.mxu0 %v1781_v14 }
 0x521   :  { %1506 = vmatprep.subr.mxu0 %v1696_v0 }
 0x522   :  { %1507 = vmatpush3.msra.mxu0 %v1807_v17 }
 0x523   :  { %1508 = vmatprep.subr.mxu0 %v1696_v0 }
 0x524   :  { %1509 = vmatpush3.msra.mxu0 %v1815_v18 }
 0x525   :  { %1510 = vmatprep.subr.mxu0 %v1696_v0 }
 0x526   :  { %1511 = vmatpush3.msra.mxu0 %v1824_v19 }
 0x527   :  { %1512 = vmatprep.subr.mxu0 %v1696_v0 }
 0x528   :  { %1513 = vmatpush3.msra.mxu0 %v1833_v20 }
 0x529   :  { %1514 = vmatprep.subr.mxu0 %v1696_v0 }
 0x52a   :  { %1515 = vmatpush3.msra.mxu0 %v1838_v21 }
 0x52b   :  { %1516 = vmatprep.subr.mxu0 %v1696_v0 }
 0x52c   :  { %1517 = vmatpush3.msra.mxu0 %v1848_v22 }
 0x52d   :  { %1518 = vmatprep.subr.mxu0 %v1696_v0 }
 0x52e   :  { %1519 = vmatpush3.msra.mxu0 %v1857_v23 }
 0x52f   :  { %1520 = vmatprep.subr.mxu0 %v1696_v0 }
 0x530   :  { %1521 = vmatpush3.msra.mxu0 %v1866_v24 }
 0x531   :  { %1522 = vmatprep.subr.mxu0 %v1696_v0 }
 0x532   :  { %1523 = vmatpush3.msra.mxu0 %v1875_v25 }
 0x533   :  { %1524 = vmatprep.subr.mxu0 %v1696_v0 }
 0x534   :  { %1525 = vmatpush3.msra.mxu0 %v1884_v26 }
 0x535   :  { %1564 = vmatprep.subr.mxu0 %v1696_v0 }
 0x5d5   :  { %v683_v27 = vpop.f32.mrf.mxu0 }
 0x5d6   :  { %v687_v28 = vadd.f32 %v683_v27, %v205_v16 }
 0x5d7   :  { %v1458_v29 = vpop.f32.mrf.mxu0 }
 0x5d8   :  { %1618 = vtanh.f32 %v687_v28 }
 0x5e5   :  { %v1619_v31 = vpop.eup %1618 }
 0x5e6   :  { %1492 = vmatmul.mubr.f32.vlgmr.msra.gmra.mxu1 %v1619_v31 }
 0x5e7   :  { %1530 = vmatpush3.msra.mxu1 %v1748_v5  ;;  %1561 = vmatprep.mubr.msk.f32.mxu1 %vm1697_vm1, %v1696_v0  ;;  %v210_v5 = vadd.f32 %v2009_v49, %v1907_v30 }
 0x5e8   :  { %1531 = vmatprep.subr.mxu1 %v1696_v0 }
 0x5e9   :  { %1532 = vmatpush3.msra.mxu1 %v1753_v6 }
 0x5ea   :  { %1533 = vmatprep.subr.mxu1 %v1696_v0 }
 0x5eb   :  { %1534 = vmatpush3.msra.mxu1 %v1760_v8 }
 0x5ec   :  { %1535 = vmatprep.subr.mxu1 %v1696_v0 }
 0x5ed   :  { %1536 = vmatpush3.msra.mxu1 %v1767_v10 }
 0x5ee   :  { %1537 = vmatprep.subr.mxu1 %v1696_v0 }
 0x5ef   :  { %1538 = vmatpush3.msra.mxu1 %v1774_v12 }
 0x5f0   :  { %1539 = vmatprep.subr.mxu1 %v1696_v0 }
 0x5f1   :  { %1540 = vmatpush3.msra.mxu1 %v1781_v14  ;;  %v923_v14 = vld [vmem:[#allocation6 + $0x78] sm:$0xff] }
 0x5f2   :  { %1541 = vmatprep.subr.mxu1 %v1696_v0 }
 0x5f3   :  { %1542 = vmatpush3.msra.mxu1 %v1807_v17  ;;  %v922_v17 = vld [vmem:[#allocation6 + $0x70] sm:$0xff] }
 0x5f4   :  { %1543 = vmatprep.subr.mxu1 %v1696_v0 }
 0x5f5   :  { %1544 = vmatpush3.msra.mxu1 %v1815_v18  ;;  %v921_v18 = vld [vmem:[#allocation6 + $0x68] sm:$0xff] }
 0x5f6   :  { %1545 = vmatprep.subr.mxu1 %v1696_v0 }
 0x5f7   :  { %1546 = vmatpush3.msra.mxu1 %v1824_v19  ;;  %v920_v19 = vld [vmem:[#allocation6 + $0x60] sm:$0xff] }
 0x5f8   :  { %1547 = vmatprep.subr.mxu1 %v1696_v0 }
 0x5f9   :  { %1548 = vmatpush3.msra.mxu1 %v1833_v20  ;;  %v919_v20 = vld [vmem:[#allocation6 + $0x58] sm:$0xff] }
 0x5fa   :  { %1549 = vmatprep.subr.mxu1 %v1696_v0 }
 0x5fb   :  { %1550 = vmatpush3.msra.mxu1 %v1838_v21  ;;  %v918_v21 = vld [vmem:[#allocation6 + $0x50] sm:$0xff] }
 0x5fc   :  { %1551 = vmatprep.subr.mxu1 %v1696_v0 }
 0x5fd   :  { %1552 = vmatpush3.msra.mxu1 %v1848_v22  ;;  %v917_v22 = vld [vmem:[#allocation6 + $0x48] sm:$0xff] }
 0x5fe   :  { %1553 = vmatprep.subr.mxu1 %v1696_v0 }
 0x5ff   :  { %1554 = vmatpush3.msra.mxu1 %v1857_v23  ;;  %v215_v23 = vadd.f32 %v1907_v30, %v2015_v52 }
 0x600   :  { %1555 = vmatprep.subr.mxu1 %v1696_v0 }
 0x601   :  { %1556 = vmatpush3.msra.mxu1 %v1866_v24 }
 0x602   :  { %1557 = vmatprep.subr.mxu1 %v1696_v0 }
 0x603   :  { %1558 = vmatpush3.msra.mxu1 %v1875_v25 }
 0x604   :  { %1559 = vmatprep.subr.mxu1 %v1696_v0 }
 0x605   :  { %1560 = vmatpush3.msra.mxu1 %v1884_v26 }
 0x6a6   :  { %v756_v6 = vpop.f32.mrf.mxu1 }
 0x6a7   :  { %v760_v8 = vadd.f32 %v756_v6, %v210_v5 }
 0x6a8   :  { %v1493_v10 = vpop.f32.mrf.mxu1 }
 0x6a9   :  { %1620 = vtanh.f32 %v760_v8 }
 0x6b6   :  { %v1621_v12 = vpop.eup %1620 }
 0x6b7   :  { %1527 = vmatmul.mubr.f32.vlgmr.msra.gmra.mxu0 %v1621_v12 }
 0x6b8   :  { %1596 = vmatprep.mubr.msk.f32.mxu0 %vm1697_vm1, %v1696_v0  ;;  %1565 = vmatpush3.msra.mxu0 %v923_v14 }
 0x6b9   :  { %1566 = vmatprep.subr.mxu0 %v1696_v0 }
 0x6ba   :  { %1567 = vmatpush3.msra.mxu0 %v922_v17 }
 0x6bb   :  { %1568 = vmatprep.subr.mxu0 %v1696_v0 }
 0x6bc   :  { %1569 = vmatpush3.msra.mxu0 %v921_v18 }
 0x6bd   :  { %1570 = vmatprep.subr.mxu0 %v1696_v0 }
 0x6be   :  { %1571 = vmatpush3.msra.mxu0 %v920_v19 }
 0x6bf   :  { %1572 = vmatprep.subr.mxu0 %v1696_v0 }
 0x6c0   :  { %1573 = vmatpush3.msra.mxu0 %v919_v20 }
 0x6c1   :  { %1574 = vmatprep.subr.mxu0 %v1696_v0 }
 0x6c2   :  { %1575 = vmatpush3.msra.mxu0 %v918_v21 }
 0x6c3   :  { %1576 = vmatprep.subr.mxu0 %v1696_v0 }
 0x6c4   :  { %1577 = vmatpush3.msra.mxu0 %v917_v22 }
 0x6c5   :  { %1578 = vmatprep.subr.mxu0 %v1696_v0 }
 0x6c6   :  { %1579 = vmatpush3.msra.mxu0 %v916_v33 }
 0x6c7   :  { %1580 = vmatprep.subr.mxu0 %v1696_v0 }
 0x6c8   :  { %1581 = vmatpush3.msra.mxu0 %v915_v34 }
 0x6c9   :  { %1582 = vmatprep.subr.mxu0 %v1696_v0 }
 0x6ca   :  { %1583 = vmatpush3.msra.mxu0 %v914_v35 }
 0x6cb   :  { %1584 = vmatprep.subr.mxu0 %v1696_v0 }
 0x6cc   :  { %1585 = vmatpush3.msra.mxu0 %v913_v36 }
 0x6cd   :  { %1586 = vmatprep.subr.mxu0 %v1696_v0 }
 0x6ce   :  { %1587 = vmatpush3.msra.mxu0 %v912_v37 }
 0x6cf   :  { %1588 = vmatprep.subr.mxu0 %v1696_v0 }
 0x6d0   :  { %1589 = vmatpush3.msra.mxu0 %v911_v38 }
 0x6d1   :  { %1590 = vmatprep.subr.mxu0 %v1696_v0 }
 0x6d2   :  { %1591 = vmatpush3.msra.mxu0 %v910_v39 }
 0x6d3   :  { %1592 = vmatprep.subr.mxu0 %v1696_v0 }
 0x6d4   :  { %1593 = vmatpush3.msra.mxu0 %v909_v40 }
 0x6d5   :  { %1594 = vmatprep.subr.mxu0 %v1696_v0 }
 0x6d6   :  { %1595 = vmatpush3.msra.mxu0 %v908_v41 }
 0x777   :  { %v829_v24 = vpop.f32.mrf.mxu0 }
 0x778   :  { %v833_v25 = vadd.f32 %v829_v24, %v215_v23 }
 0x779   :  { %v1528_v26 = vpop.f32.mrf.mxu0 }
 0x77a   :  { %1622 = vtanh.f32 %v833_v25 }
 0x787   :  { %v1623_v32 = vpop.eup %1622 }
 0x788   :  { %1562 = vmatmul.mubr.f32.vlgmr.msra.gmra.mxu1 %v1623_v32 }
 0x848   :  { %v902_v43 = vpop.f32.mrf.mxu1 }
 0x849   :  { %v906_v44 = vadd.f32 %v902_v43, %v220_v42 }
 0x84a   :  { %v1563_v45 = vpop.f32.mrf.mxu1 }
 0x84b   :  { %1624 = vtanh.f32 %v906_v44 }
 0x858   :  { %v1625_v46 = vpop.eup %1624 }
 0x859   :  { %1597 = vmatmul.mubr.f32.vlgmr.msra.gmra.mxu0 %v1625_v46 }
 0x919   :  { %v997_v48 = vpop.f32.mrf.mxu0 }
 0x91a   :  { %v998_v49 = vadd.f32 %v1029_v47, %v997_v48 }
 0x91b   :  { %v1598_v0 = vpop.f32.mrf.mxu0 }
 0x91c   :  { %1001 = vst [vmem:[#allocation8] sm:$0xff] %v998_v49 }
 0x91d   :  { %1677 = shalt.err (!%p1674_p0)
}
 0x91e   :  { %1011 = dma.vmem_to_hbm [thread:$0]  %s1009_s4, 128, %s2229_s6, [#allocation5]  }
 0x91f   :  { %1690 = dma.done.wait [#allocation5], 128  }
 0x920   :  { %1691 = vsyncadd [#allocation5], 4294967168 }
 0x921   :  { %1015 = vsyncpa [#allocation4], 1 }
 0x922   :  { %1016 = vsyncpa [#allocation7], 1 }
 0x923   :  { %1017 = vsyncpa [#allocation5], 1 }

</bundles_post_ra>
